<compile_context>
chip_gen: v5e
topology: v5e:2x2
jax: 0.10.0
libtpu: 0.0.40
codegen_flags: <defaults>
</compile_context>

<pallas_src>
import jax
import jax.numpy as jnp
from jax.experimental import pallas as pl
from jax.experimental.pallas import tpu as pltpu

D_MODEL = 768   # classifier input dim (T5-base hidden size)
D_HID = 384     # classifier hidden dim
N_CLS = 2       # classifier output dim
N_PAD = 128     # lane-padded output dim (lane-dense stores, full MXU columns)


def _round_up(x, m):
    return ((x + m - 1) // m) * m


def _classifier_kernel(x_ref, w1_ref, b1_ref, w2_ref, b2_ref, o_ref):
    # x_ref : (tm, 768)  bf16     w1_ref: (768, 384) bf16   b1_ref: (1, 384) f32
    # w2_ref: (384, 128) bf16     b2_ref: (1, 128)   f32    o_ref : (tm, 128) f32
    h = jnp.dot(x_ref[...], w1_ref[...], preferred_element_type=jnp.float32)
    h = jnp.maximum(h + b1_ref[...], 0.0)                       # bias + ReLU (f32)
    logits = jnp.dot(h.astype(jnp.bfloat16), w2_ref[...],
                     preferred_element_type=jnp.float32)
    o_ref[...] = (logits + b2_ref[...]).astype(o_ref.dtype)


def classifier_head(x_flat, w1, b1, w2, b2, *, tm=512):
    """x_flat: [M, 768] -> logits [M, 2].  Any M >= 1 is accepted."""
    M, K = x_flat.shape
    assert K == D_MODEL

    # Row tile: at most `tm`, 8-row aligned, and chosen so the grid has at
    # least 2 steps when M allows it (v7x has 2 TensorCores per chip).
    tm_eff = int(min(tm, _round_up(max(-(-M // 2), 8), 8)))
    M_pad = _round_up(M, tm_eff)
    grid = (M_pad // tm_eff,)

    # bf16 activations/weights for full MXU throughput; f32 accumulation.
    x_p = x_flat.astype(jnp.bfloat16)
    if M_pad != M:
        x_p = jnp.pad(x_p, ((0, M_pad - M), (0, 0)))
    w1_b = w1.astype(jnp.bfloat16)
    b1_f = b1.astype(jnp.float32).reshape(1, D_HID)
    # Zero-pad the 2-wide output projection to 128 lanes.
    w2_b = jnp.zeros((D_HID, N_PAD), jnp.bfloat16).at[:, :N_CLS].set(
        w2.astype(jnp.bfloat16))
    b2_f = jnp.zeros((1, N_PAD), jnp.float32).at[:, :N_CLS].set(
        b2.astype(jnp.float32).reshape(1, N_CLS))

    flops = 2 * M_pad * (D_MODEL * D_HID + D_HID * N_PAD)
    bytes_accessed = (M_pad * D_MODEL * 2          # x (bf16)
                      + D_MODEL * D_HID * 2        # w1 (bf16)
                      + D_HID * N_PAD * 2          # w2 (bf16)
                      + (D_HID + N_PAD) * 4        # biases (f32)
                      + M_pad * N_PAD * 4)         # output (f32)

    out = pl.pallas_call(
        _classifier_kernel,
        out_shape=jax.ShapeDtypeStruct((M_pad, N_PAD), jnp.float32),
        grid_spec=pltpu.PrefetchScalarGridSpec(
            num_scalar_prefetch=0,
            grid=grid,
            in_specs=[
                pl.BlockSpec((tm_eff, D_MODEL), lambda i: (i, 0)),
                pl.BlockSpec((D_MODEL, D_HID), lambda i: (0, 0)),
                pl.BlockSpec((1, D_HID), lambda i: (0, 0)),
                pl.BlockSpec((D_HID, N_PAD), lambda i: (0, 0)),
                pl.BlockSpec((1, N_PAD), lambda i: (0, 0)),
            ],
            out_specs=pl.BlockSpec((tm_eff, N_PAD), lambda i: (i, 0)),
        ),
        compiler_params=pltpu.CompilerParams(
            dimension_semantics=("parallel",),
        ),
        cost_estimate=pl.CostEstimate(
            flops=flops, transcendentals=0, bytes_accessed=bytes_accessed),
    )(x_p, w1_b, b1_f, w2_b, b2_f)

    # Drop row padding and the 126 zero lanes.
    return out[:M, :N_CLS]


def t5_wrapper_forward(nll_loss, encoder_last_hidden_state, params,
                       with_predictive_head=True):
    """Mirrors T5Wrapper.forward after the backbone call.

    nll_loss: scalar loss produced by the (external) T5 model.
    encoder_last_hidden_state: [B, S, 768].
    Returns (nll_loss, logits[B, S, 2]) if with_predictive_head else nll_loss.
    """
    if not with_predictive_head:
        return nll_loss
    B, S, D = encoder_last_hidden_state.shape
    x_flat = encoder_last_hidden_state.reshape(B * S, D)
    logits_flat = classifier_head(
        x_flat, params["w1"], params["b1"], params["w2"], params["b2"]
    )
    logits = logits_flat.reshape(B, S, N_CLS)
    return nll_loss, logits


def init_classifier_params(key):
    """Deterministic init matching nn.Linear default: U(-1/sqrt(fan_in), +1/sqrt(fan_in))."""
    k1, k2, k3, k4 = jax.random.split(key, 4)
    bound1 = 1.0 / (D_MODEL ** 0.5)
    bound2 = 1.0 / (D_HID ** 0.5)
    return {
        "w1": jax.random.uniform(k1, (D_MODEL, D_HID), jnp.float32, -bound1, bound1),
        "b1": jax.random.uniform(k2, (1, D_HID), jnp.float32, -bound1, bound1),
        "w2": jax.random.uniform(k3, (D_HID, N_CLS), jnp.float32, -bound2, bound2),
        "b2": jax.random.uniform(k4, (1, N_CLS), jnp.float32, -bound2, bound2),
    }


if __name__ == "__main__":
    key = jax.random.PRNGKey(0)
    k_params, k_hidden, k_loss = jax.random.split(key, 3)

    B, S = 2, 8   # small batch / sequence length
    params = init_classifier_params(k_params)

    # Surrogate outputs of the external T5 backbone (TODO(synk) above).
    encoder_last_hidden_state = jax.random.normal(
        k_hidden, (B, S, D_MODEL), dtype=jnp.float32)
    nll_loss = jnp.abs(jax.random.normal(k_loss, (), dtype=jnp.float32))

    nll_out, logits = t5_wrapper_forward(
        nll_loss, encoder_last_hidden_state, params, with_predictive_head=True)
    jax.block_until_ready((nll_out, logits))

    # Reference check in plain JAX (same bf16-input / f32-accumulate recipe).
    x = encoder_last_hidden_state.reshape(B * S, D_MODEL)
    xb = x.astype(jnp.bfloat16)
    w1b = params["w1"].astype(jnp.bfloat16)
    w2b = params["w2"].astype(jnp.bfloat16)
    h_ref = jnp.maximum(
        jnp.dot(xb, w1b, preferred_element_type=jnp.float32) + params["b1"], 0.0)
    logits_ref = (jnp.dot(h_ref.astype(jnp.bfloat16), w2b,
                          preferred_element_type=jnp.float32)
                  + params["b2"]).reshape(B, S, N_CLS)
    assert logits.shape == (B, S, N_CLS)
    assert jnp.allclose(logits, logits_ref, atol=2e-2, rtol=2e-2)

    print("KERNEL_OK")
</pallas_src>

<mosaic_0001>
module attributes {stable_mosaic.version = 11 : i64} {
  func.func @_classifier_kernel(%arg0: i32, %arg1: memref<8x768xbf16, #tpu.memory_space<vmem>>, %arg2: memref<768x384xbf16, #tpu.memory_space<vmem>>, %arg3: memref<1x384xf32, #tpu.memory_space<vmem>>, %arg4: memref<384x128xbf16, #tpu.memory_space<vmem>>, %arg5: memref<1x128xf32, #tpu.memory_space<vmem>>, %arg6: memref<8x128xf32, #tpu.memory_space<vmem>>) attributes {dimension_semantics = [#tpu.dimension_semantics<parallel>], iteration_bounds = array<i64: 2>, scalar_prefetch = 0 : i64, scratch_operands = 0 : i64, tpu.core_type = #tpu.core_type<tc>, window_params = [{transform_indices = @transform_0, window_bounds = array<i64: 8, 768>}, {pipeline_mode = #tpu.pipeline_mode<synchronous>, transform_indices = @transform_1, window_bounds = array<i64: 768, 384>}, {pipeline_mode = #tpu.pipeline_mode<synchronous>, transform_indices = @transform_2, window_bounds = array<i64: 1, 384>}, {pipeline_mode = #tpu.pipeline_mode<synchronous>, transform_indices = @transform_3, window_bounds = array<i64: 384, 128>}, {pipeline_mode = #tpu.pipeline_mode<synchronous>, transform_indices = @transform_4, window_bounds = array<i64: 1, 128>}, {transform_indices = @transform_5, window_bounds = array<i64: 8, 128>}]} {
    %c0 = arith.constant 0 : index
    %c0_0 = arith.constant 0 : index
    %0 = vector.load %arg1[%c0, %c0_0] : memref<8x768xbf16, #tpu.memory_space<vmem>>, vector<8x768xbf16>
    %c0_1 = arith.constant 0 : index
    %c0_2 = arith.constant 0 : index
    %1 = vector.load %arg2[%c0_1, %c0_2] : memref<768x384xbf16, #tpu.memory_space<vmem>>, vector<768x384xbf16>
    %cst = arith.constant dense<0.000000e+00> : vector<8x384xf32>
    %2 = tpu.matmul %0, %1, %cst {dimension_numbers = #tpu.dot_dimension_numbers<[1], [0], [0], [1], [0, 0, 1, 1], [], []>} : vector<8x768xbf16>, vector<768x384xbf16>, vector<8x384xf32> -> vector<8x384xf32>
    %c0_3 = arith.constant 0 : index
    %c0_4 = arith.constant 0 : index
    %3 = vector.load %arg3[%c0_3, %c0_4] : memref<1x384xf32, #tpu.memory_space<vmem>>, vector<1x384xf32>
    %4 = vector.broadcast %3 : vector<1x384xf32> to vector<8x384xf32>
    %5 = arith.addf %2, %4 : vector<8x384xf32>
    %cst_5 = arith.constant 0.000000e+00 : f32
    %6 = vector.broadcast %cst_5 : f32 to vector<8x384xf32>
    %7 = arith.maximumf %5, %6 : vector<8x384xf32>
    %8 = arith.truncf %7 : vector<8x384xf32> to vector<8x384xbf16>
    %c0_6 = arith.constant 0 : index
    %c0_7 = arith.constant 0 : index
    %9 = vector.load %arg4[%c0_6, %c0_7] : memref<384x128xbf16, #tpu.memory_space<vmem>>, vector<384x128xbf16>
    %cst_8 = arith.constant dense<0.000000e+00> : vector<8x128xf32>
    %10 = tpu.matmul %8, %9, %cst_8 {dimension_numbers = #tpu.dot_dimension_numbers<[1], [0], [0], [1], [0, 0, 1, 1], [], []>} : vector<8x384xbf16>, vector<384x128xbf16>, vector<8x128xf32> -> vector<8x128xf32>
    %c0_9 = arith.constant 0 : index
    %c0_10 = arith.constant 0 : index
    %11 = vector.load %arg5[%c0_9, %c0_10] : memref<1x128xf32, #tpu.memory_space<vmem>>, vector<1x128xf32>
    %12 = vector.broadcast %11 : vector<1x128xf32> to vector<8x128xf32>
    %13 = arith.addf %10, %12 : vector<8x128xf32>
    %c0_11 = arith.constant 0 : index
    %c0_12 = arith.constant 0 : index
    %14 = vector.load %arg6[%c0_11, %c0_12] : memref<8x128xf32, #tpu.memory_space<vmem>>, vector<8x128xf32>
    tpu.vector_store %arg6[%c0_11, %c0_12], %13 {strides = array<i32>} : memref<8x128xf32, #tpu.memory_space<vmem>>, vector<8x128xf32>,
    return
  }
  func.func @transform_0(%arg0: i32) -> (i32, i32) {
    %c0_i32 = arith.constant 0 : i32
    %c0_i32_0 = arith.constant 0 : i32
    return %arg0, %c0_i32 : i32, i32
  }
  func.func @transform_1(%arg0: i32) -> (i32, i32) {
    %c0_i32 = arith.constant 0 : i32
    %c0_i32_0 = arith.constant 0 : i32
    %c0_i32_1 = arith.constant 0 : i32
    return %c0_i32, %c0_i32_0 : i32, i32
  }
  func.func @transform_2(%arg0: i32) -> (i32, i32) {
    %c0_i32 = arith.constant 0 : i32
    %c0_i32_0 = arith.constant 0 : i32
    %c0_i32_1 = arith.constant 0 : i32
    return %c0_i32, %c0_i32_0 : i32, i32
  }
  func.func @transform_3(%arg0: i32) -> (i32, i32) {
    %c0_i32 = arith.constant 0 : i32
    %c0_i32_0 = arith.constant 0 : i32
    %c0_i32_1 = arith.constant 0 : i32
    return %c0_i32, %c0_i32_0 : i32, i32
  }
  func.func @transform_4(%arg0: i32) -> (i32, i32) {
    %c0_i32 = arith.constant 0 : i32
    %c0_i32_0 = arith.constant 0 : i32
    %c0_i32_1 = arith.constant 0 : i32
    return %c0_i32, %c0_i32_0 : i32, i32
  }
  func.func @transform_5(%arg0: i32) -> (i32, i32) {
    %c0_i32 = arith.constant 0 : i32
    %c0_i32_0 = arith.constant 0 : i32
    return %arg0, %c0_i32 : i32, i32
  }
}

</mosaic_0001>

<bundles_post_ra>
// kernel: tpu_custom_call.1
= control target key start
LH: loop header
LB: loop body
LE: loop exit
PB: predicated region body
PF: predicated region fallthrough
CT: control target
= control target key end

     0   :  { %s3248_s0 = inlined_call_operand.hbm [shape: bf16[16,768], index: 0, kind: input, shape index: {}]   ;;  %s3249_s1 = inlined_call_operand.hbm [shape: bf16[768,384], index: 1, kind: input, shape index: {}]   ;;  %s3250_s2 = inlined_call_operand.hbm [shape: f32[1,384], index: 2, kind: input, shape index: {}]   ;;  %s3251_s3 = inlined_call_operand.hbm [shape: bf16[384,128], index: 3, kind: input, shape index: {}]   ;;  %s3252_s4 = inlined_call_operand.vmem [shape: f32[1,128], index: 4, kind: input, shape index: {}]   ;;  %s3253_s5 = inlined_call_operand.hbm [shape: f32[16,128], index: 5, kind: output, shape index: {}]  }
   0x1   :  { %3254 = sst [smem:[#allocation15_spill]] %s3249_s1 }
   0x2   :  { %3255 = sst [smem:[#allocation16_spill]] %s3250_s2 }
   0x3   :  { %10 = vsyncpa [#allocation3], 0 }
   0x4   :  { %12 = vsyncpa [#allocation3 + $0x1], 0 }
   0x5   :  { %13 = vsyncpa [#allocation6], 0 }
   0x6   :  { %14 = vsyncpa [#allocation9], 0 }
   0x7   :  { %15 = vsyncpa [#allocation4], 0 }
   0x8   :  { %17 = vsyncpa [#allocation4 + $0x1], 0  ;;  %s3048_s18 = smov 0   ;;  %s3050_s19 = smov 0  }
   0x9   :  { %s3052_s20 = smov 0   ;;  %s3054_s21 = smov 0  }
   0xa LB: > { %s3256_s1 = sld [smem:[#allocation15_spill]]  ;;  %s3072_s25 = sadd.s32 4294967295, %s3009_s21   ;;  %s3009_s21 = sphi %s3054_s21, %s3268_s21   ;;  %s3005_s20 = sphi %s3052_s20, %s3267_s20   ;;  %s3001_s19 = sphi %s3050_s19, %s3266_s19   ;;  %s2997_s18 = sphi %s3048_s18, %s3265_s18  }
   0xb   : > { %p1875_p0 = scmp.ge.s32.totalorder %s3009_s21, 1  ;;  %p44_p1 = scmp.eq.s32.totalorder %s3072_s25, 0 }
   0xc   : > { %p164_p2 = scmp.lt.s32.totalorder %s3009_s21, 3  ;;  %s3011_s27 = smov [#allocation5]  }
   0xd   : > { %s177_s28 = sshll.u32 %s3011_s27, 4  ;;  %s3258_s2 = sld [smem:[#allocation16_spill]]  ;;  %s178_s28 = int_to_ptr.vmem [resolvable:$true] %s177_s28 }
   0xe   : > { %p3077_p3 = pnand %p1875_p0, %p164_p2  ;;  %s201_s10 = sshll.u32 %s3251_s3, 4  ;;  %s202_s10 = int_to_ptr.hbm [resolvable:$true] %s201_s10 }
   0xf   : > { %s3012_s11 = smov [#allocation7]   ;;  %s3013_s13 = smov 192  }
  0x10   : > { %s175_s24 = sshll.u32 %s3256_s1, 4  ;;  %p2749_p4 = pneg %p3077_p3  ;;  %s176_s24 = int_to_ptr.hbm [resolvable:$true] %s175_s24 }
  0x11   : > { %s192_s12 = sshll.u32 %s3012_s11, 4  ;;  %s3014_s14 = smov 12   ;;  %s193_s12 = int_to_ptr.vmem [resolvable:$true] %s192_s12 }
  0x12   : > { %p3089_p6 = pnand %p2749_p4, %p44_p1  ;;  %s3015_s15 = smov [#allocation8]  }
  0x13   : > { %s190_s6 = sshll.u32 %s3258_s2, 4  ;;  %s203_s16 = sshll.u32 %s3015_s15, 4  ;;  %s191_s6 = int_to_ptr.hbm [resolvable:$true] %s190_s6  ;;  %s204_s16 = int_to_ptr.vmem [resolvable:$true] %s203_s16 }
  0x14   : > { %2752 = dma.hbm_to_vmem [thread:$0]  (!%p3089_p6), %s176_s24, 18432, %s178_s28, [#allocation6], %s3013_s13, %s3013_s13, %s3014_s14  }
  0x15   : > { %2755 = dma.hbm_to_vmem [thread:$0]  (!%p3089_p6), %s191_s6, 48, %s193_s12, [#allocation6]  }
  0x16   : > { %s3016_s17 = smov 64   ;;  %s3017_s22 = smov 4  }
  0x17   : > { %2758 = dma.hbm_to_vmem [thread:$0]  (!%p3089_p6), %s202_s10, 3072, %s204_s16, [#allocation9], %s3016_s17, %s3016_s17, %s3017_s22  }
  0x18   : > { %s1874_s23 = sadd.s32 4294967294, %s3009_s21   ;;  %s3104_s24 = sadd.s32 1, %s3009_s21  }
  0x19   : > { %s30_s27 = sadd.s32 1, %s3005_s20  ;;  %s27_s28 = ssub.s32 %s3009_s21, %s3104_s24 }
  0x1a   : > { %p37_p7 = scmp.ne.s32.totalorder %s3005_s20, %s3001_s19  ;;  %p28_p8 = scmp.eq.s32.totalorder %s27_s28, 0 }
  0x1b   : > { %p38_p9 = scmp.eq.s32.totalorder %s3009_s21, 0  ;;  %p43_p10 = scmp.ne.s32.totalorder %s3001_s19, %s2997_s18 }
  0x1c   : > { %p151_p11 = scmp.eq.s32.totalorder %s3072_s25, 1  ;;  %p157_p2 = scmp.eq.s32.totalorder %s1874_s23, 1 }
  0x1d   : > { %s3116_s29 = scalar_select %p28_p8, %s3005_s20, %s30_s27  }
  0x1e   : > { %p39_p12 = por %p38_p9, %p37_p7  ;;  %p3120_p13 = por %p44_p1, %p43_p10 }
  0x1f   : > { %p3124_p0 = por %p151_p11, %p37_p7  ;;  %p2770_p4 = scmp.lt.s32.totalorder %s3009_s21, 2 }
  0x20   : > { %s220_s7 = sand.u32 1, %s3005_s20   ;;  %p3130_p6 = por %p157_p2, %p43_p10 }
  0x21   : > { %s2730_s9 = smul.u32 24, %s220_s7  ;;  %p3134_p8 = pnand %p2770_p4, %p39_p12 }
  0x22   : > { %s2731_s11 = smul.u32 24, %s3009_s21  ;;  %s221_s22 = scalar_lea.sflag [#allocation3], %s220_s7 }
  0x23   : > { %s224_s15 = scalar_lea.vmem [#allocation2], %s2730_s9  ;;  %p2909_p9 = pneg %p3134_p8 }
  0x24   : > { %s229_s14 = scalar_lea.hbm %s3248_s0, %s2731_s11  ;;  %s233_s16 = sshll.u32 %s224_s15, 4  ;;  %s234_s16 = int_to_ptr.vmem [resolvable:$true] %s233_s16 }
  0x25   : > { %s231_s17 = sshll.u32 %s229_s14, 4  ;;  %s2912_s2 = scalar_lea.hbm %s3248_s0, 48  ;;  %s232_s17 = int_to_ptr.hbm [resolvable:$true] %s231_s17 }
  0x26   : > { %s2905_s23 = sshra.s32 %s232_s17, 4  ;;  %s2906_s23 = int_to_ptr.hbm [resolvable:$true] %s2905_s23 }
  0x27   : > { %s2907_s27 = scalar_lea.hbm %s2906_s23, 24  ;;  %p2913_p12 = scmp.lt.s32.totalorder %s2906_s23, %s3248_s0 }
  0x28   : > { %p2908_p7 = scmp.ne.s32.totalorder %s2906_s23, %s2907_s27  ;;  %p2914_p2 = scmp.lt.s32.totalorder %s2912_s2, %s2907_s27 }
  0x2a   : > { %p2910_p10 = pnand %p2909_p9, %p2908_p7  ;;  %p2915_p4 = por %p2914_p2, %p2913_p12 }
  0x2c   : > { %p2911_p11 = pneg %p2910_p10 }
  0x2e   : > { %p2916_p5 = pnand %p2915_p4, %p2911_p11 }
  0x30   : > { %2919 = shalt.err (!%p2916_p5)
}
  0x31   : > { %2762 = dma.hbm_to_vmem [thread:$0]  (!%p3134_p8), %s232_s17, 384, %s234_s16, %s221_s22  }
  0x32   : > { %242 = sbr.rel (%p3077_p3) target bundleno = 490 (0x1ea), region = 40  ;;  %s3155_s7 = sand.u32 (!%p3077_p3), 1, %s3001_s19  }
  0x33   : > { %s2732_s1 = smul.u32 (!%p3077_p3), 24, %s3155_s7  ;;  %s245_s9 = scalar_lea.sflag (!%p3077_p3), [#allocation3], %s3155_s7 }
  0x35   : > { %s3159_s13 = scalar_lea.vmem (!%p3077_p3), [#allocation2], %s2732_s1 }
  0x37   : > { %2980 = dma.done.wait (%p3120_p13), %s245_s9, 384  }
  0x38   : > { %2982 = vsyncadd (%p3120_p13), %s245_s9, 4294966912 }
  0x39   : > { %2984 = dma.done.wait (%p44_p1), [#allocation6], 18480  }
  0x3a   : > { %2986 = vsyncadd (%p44_p1), [#allocation6], 4294948816 }
  0x3b   : > { %2988 = dma.done.wait (%p44_p1), [#allocation9], 3072  }
  0x3c   : > { %2990 = vsyncadd (%p44_p1), [#allocation9], 4294964224  ;;  %v1972_v0 = vld [vmem:[#allocation5 + $0xa8] sm:$0xf]  ;;  %v2584_v1 = vld [vmem:[#allocation5 + $0xb0] sm:$0xf0] }
  0x3d   : > { %v2068_v2 = vld [vmem:[#allocation5 + $0x168] sm:$0xf]  ;;  %v1973_v3 = vor.u32 %v2584_v1, %v1972_v0  ;;  %v2608_v4 = vld [vmem:[#allocation5 + $0x170] sm:$0xf0]  ;;  %v1960_v11 = vld [vmem:[#allocation5 + $0x90] sm:$0xf] }
  0x3e   : > { %v2164_v5 = vld [vmem:[#allocation5 + $0x228] sm:$0xf]  ;;  %v2632_v6 = vld [vmem:[#allocation5 + $0x230] sm:$0xf0]  ;;  %v2069_v7 = vor.u32 %v2608_v4, %v2068_v2  ;;  %v2581_v13 = vld [vmem:[#allocation5 + $0x98] sm:$0xf0] }
  0x3f   : > { %v2165_v8 = vor.u32 %v2632_v6, %v2164_v5  ;;  %v2260_v9 = vld [vmem:[#allocation5 + $0x2e8] sm:$0xf]  ;;  %v2656_v10 = vld [vmem:[#allocation5 + $0x2f0] sm:$0xf0]  ;;  %1283 = vmatpush.bf16.msra.mxu0 %v1973_v3  ;;  %v2056_v14 = vld [vmem:[#allocation5 + $0x150] sm:$0xf]  ;;  %v1961_v16 = vor.u32 %v2581_v13, %v1960_v11 }
  0x40   : > { %v2261_v12 = vor.u32 %v2656_v10, %v2260_v9  ;;  %v2605_v15 = vld [vmem:[#allocation5 + $0x158] sm:$0xf0]  ;;  %1296 = vmatpush.bf16.msra.mxu1 %v2069_v7  ;;  %v2152_v18 = vld [vmem:[#allocation5 + $0x210] sm:$0xf]  ;;  %v1948_v23 = vld [vmem:[#allocation5 + $0x78] sm:$0xf] }
  0x41   : > { %1309 = vmatpush.bf16.msra.mxu2 %v2165_v8  ;;  %v2057_v17 = vor.u32 %v2605_v15, %v2056_v14  ;;  %v2629_v19 = vld [vmem:[#allocation5 + $0x218] sm:$0xf0]  ;;  %v2248_v20 = vld [vmem:[#allocation5 + $0x2d0] sm:$0xf]  ;;  %v2578_v24 = vld [vmem:[#allocation5 + $0x80] sm:$0xf0] }
  0x42   : > { %1322 = vmatpush.bf16.msra.mxu3 %v2261_v12  ;;  %v2153_v21 = vor.u32 %v2629_v19, %v2152_v18  ;;  %v2653_v22 = vld [vmem:[#allocation5 + $0x2d8] sm:$0xf0]  ;;  %v2044_v26 = vld [vmem:[#allocation5 + $0x138] sm:$0xf]  ;;  %v2602_v27 = vld [vmem:[#allocation5 + $0x140] sm:$0xf0]  ;;  %v1949_v29 = vor.u32 %v2578_v24, %v1948_v23 }
  0x43   : > { %v2249_v25 = vor.u32 %v2653_v22, %v2248_v20  ;;  %v2140_v28 = vld [vmem:[#allocation5 + $0x1f8] sm:$0xf]  ;;  %1284 = vmatpush.bf16.msra.mxu0 %v1961_v16  ;;  %v2626_v30 = vld [vmem:[#allocation5 + $0x200] sm:$0xf0]  ;;  %v2045_v33 = vor.u32 %v2602_v27, %v2044_v26  ;;  %v1936_v35 = vld [vmem:[#allocation5 + $0x60] sm:$0xf] }
  0x44   : > { %v2236_v31 = vld [vmem:[#allocation5 + $0x2b8] sm:$0xf]  ;;  %v2650_v32 = vld [vmem:[#allocation5 + $0x2c0] sm:$0xf0]  ;;  %1297 = vmatpush.bf16.msra.mxu1 %v2057_v17  ;;  %v2141_v34 = vor.u32 %v2626_v30, %v2140_v28  ;;  %v2575_v36 = vld [vmem:[#allocation5 + $0x68] sm:$0xf0] }
  0x45   : > { %1310 = vmatpush.bf16.msra.mxu2 %v2153_v21  ;;  %v2032_v37 = vld [vmem:[#allocation5 + $0x120] sm:$0xf]  ;;  %v2237_v38 = vor.u32 %v2650_v32, %v2236_v31  ;;  %v2599_v39 = vld [vmem:[#allocation5 + $0x128] sm:$0xf0]  ;;  %v1937_v44 = vor.u32 %v2575_v36, %v1936_v35  ;;  %v1924_v47 = vld [vmem:[#allocation5 + $0x48] sm:$0xf] }
  0x46   : > { %1323 = vmatpush.bf16.msra.mxu3 %v2249_v25  ;;  %v2128_v40 = vld [vmem:[#allocation5 + $0x1e0] sm:$0xf]  ;;  %v2623_v41 = vld [vmem:[#allocation5 + $0x1e8] sm:$0xf0]  ;;  %v2033_v45 = vor.u32 %v2599_v39, %v2032_v37  ;;  %v2572_v48 = vld [vmem:[#allocation5 + $0x50] sm:$0xf0] }
  0x47   : > { %v2224_v42 = vld [vmem:[#allocation5 + $0x2a0] sm:$0xf]  ;;  %v2647_v43 = vld [vmem:[#allocation5 + $0x2a8] sm:$0xf0]  ;;  %1285 = vmatpush.bf16.msra.mxu0 %v1949_v29  ;;  %v2129_v46 = vor.u32 %v2623_v41, %v2128_v40  ;;  %v2020_v49 = vld [vmem:[#allocation5 + $0x108] sm:$0xf]  ;;  %v1925_v56 = vor.u32 %v2572_v48, %v1924_v47 }
  0x48   : > { %1298 = vmatpush.bf16.msra.mxu1 %v2045_v33  ;;  %v2225_v50 = vor.u32 %v2647_v43, %v2224_v42  ;;  %v2596_v51 = vld [vmem:[#allocation5 + $0x110] sm:$0xf0]  ;;  %v2116_v52 = vld [vmem:[#allocation5 + $0x1c8] sm:$0xf]  ;;  %v1912_v59 = vld [vmem:[#allocation5 + $0x30] sm:$0xf] }
  0x49   : > { %1311 = vmatpush.bf16.msra.mxu2 %v2141_v34  ;;  %v2620_v53 = vld [vmem:[#allocation5 + $0x1d0] sm:$0xf0]  ;;  %v2212_v54 = vld [vmem:[#allocation5 + $0x288] sm:$0xf]  ;;  %v2021_v57 = vor.u32 %v2596_v51, %v2020_v49  ;;  %v2569_v60 = vld [vmem:[#allocation5 + $0x38] sm:$0xf0] }
  0x4a   : > { %1324 = vmatpush.bf16.msra.mxu3 %v2237_v38  ;;  %v2644_v55 = vld [vmem:[#allocation5 + $0x290] sm:$0xf0]  ;;  %v2117_v58 = vor.u32 %v2620_v53, %v2116_v52  ;;  %v2008_v61 = vld [vmem:[#allocation5 + $0xf0] sm:$0xf]  ;;  %v2593_v63 = vld [vmem:[#allocation5 + $0xf8] sm:$0xf0]  ;;  %v1913_v4 = vor.u32 %v2569_v60, %v1912_v59 }
  0x4b   : > { %1286 = vmatpush.bf16.msra.mxu0 %v1937_v44  ;;  %v2213_v62 = vor.u32 %v2644_v55, %v2212_v54  ;;  %v2104_v0 = vld [vmem:[#allocation5 + $0x1b0] sm:$0xf]  ;;  %v2617_v1 = vld [vmem:[#allocation5 + $0x1b8] sm:$0xf0]  ;;  %v2009_v5 = vor.u32 %v2593_v63, %v2008_v61  ;;  %v1900_v7 = vld [vmem:[#allocation5 + $0x18] sm:$0xf] }
  0x4c   : > { %1299 = vmatpush.bf16.msra.mxu1 %v2033_v45  ;;  %v2200_v2 = vld [vmem:[#allocation5 + $0x270] sm:$0xf]  ;;  %v2641_v3 = vld [vmem:[#allocation5 + $0x278] sm:$0xf0]  ;;  %v2105_v6 = vor.u32 %v2617_v1, %v2104_v0  ;;  %v2566_v8 = vld [vmem:[#allocation5 + $0x20] sm:$0xf0] }
  0x4d   : > { %1312 = vmatpush.bf16.msra.mxu2 %v2129_v46  ;;  %v1996_v9 = vld [vmem:[#allocation5 + $0xd8] sm:$0xf]  ;;  %v2201_v10 = vor.u32 %v2641_v3, %v2200_v2  ;;  %v2590_v11 = vld [vmem:[#allocation5 + $0xe0] sm:$0xf0]  ;;  %v1901_v16 = vor.u32 %v2566_v8, %v1900_v7  ;;  %v1888_v17 = vld [vmem:[#allocation5] sm:$0xf] }
  0x4e   : > { %1325 = vmatpush.bf16.msra.mxu3 %v2225_v50  ;;  %v2092_v12 = vld [vmem:[#allocation5 + $0x198] sm:$0xf]  ;;  %v2614_v13 = vld [vmem:[#allocation5 + $0x1a0] sm:$0xf0]  ;;  %v2563_v18 = vld [vmem:[#allocation5 + $0x8] sm:$0xf0]  ;;  %v1997_v19 = vor.u32 %v2590_v11, %v1996_v9 }
  0x4f   : > { %1287 = vmatpush.bf16.msra.mxu0 %v1925_v56  ;;  %v2188_v14 = vld [vmem:[#allocation5 + $0x258] sm:$0xf]  ;;  %v2638_v15 = vld [vmem:[#allocation5 + $0x260] sm:$0xf0]  ;;  %v2093_v20 = vor.u32 %v2614_v13, %v2092_v12  ;;  %v1984_v21 = vld [vmem:[#allocation5 + $0xc0] sm:$0xf]  ;;  %v1889_v31 = vor.u32 %v2563_v18, %v1888_v17 }
  0x50   : > { %1300 = vmatpush.bf16.msra.mxu1 %v2021_v57  ;;  %v2587_v22 = vld [vmem:[#allocation5 + $0xc8] sm:$0xf0]  ;;  %v2080_v23 = vld [vmem:[#allocation5 + $0x180] sm:$0xf]  ;;  %v2189_v24 = vor.u32 %v2638_v15, %v2188_v14  ;;  %v2356_v26 = vld [vmem:[#allocation5 + $0x3a8] sm:$0xf] }
  0x51   : > { %1313 = vmatpush.bf16.msra.mxu2 %v2117_v58  ;;  %v2611_v25 = vld [vmem:[#allocation5 + $0x188] sm:$0xf0]  ;;  %v2680_v27 = vld [vmem:[#allocation5 + $0x3b0] sm:$0xf0]  ;;  %v2452_v28 = vld [vmem:[#allocation5 + $0x468] sm:$0xf]  ;;  %v1985_v35 = vor.u32 %v2587_v22, %v1984_v21 }
  0x52   : > { %1326 = vmatpush.bf16.msra.mxu3 %v2213_v62  ;;  %v2704_v29 = vld [vmem:[#allocation5 + $0x470] sm:$0xf0]  ;;  %v2583_v30 = vld [vmem:[#allocation5 + $0xac] sm:$0xf]  ;;  %v1974_v32 = vld [vmem:[#allocation5 + $0xb4] sm:$0xf0]  ;;  %v2081_v36 = vor.u32 %v2611_v25, %v2080_v23  ;;  %v2357_v39 = vor.u32 %v2680_v27, %v2356_v26 }
  0x53   : > { %1288 = vmatpush.bf16.msra.mxu0 %v1913_v4  ;;  %v2176_v33 = vld [vmem:[#allocation5 + $0x240] sm:$0xf]  ;;  %v2635_v34 = vld [vmem:[#allocation5 + $0x248] sm:$0xf0]  ;;  %v2070_v38 = vld [vmem:[#allocation5 + $0x174] sm:$0xf0]  ;;  %v2453_v40 = vor.u32 %v2704_v29, %v2452_v28  ;;  %v1977_v42 = vor.u32 %v2583_v30, %v1974_v32 }
  0x54   : > { %1301 = vmatpush.bf16.msra.mxu1 %v2009_v5  ;;  %v2607_v37 = vld [vmem:[#allocation5 + $0x16c] sm:$0xf]  ;;  %v2344_v41 = vld [vmem:[#allocation5 + $0x390] sm:$0xf]  ;;  %v2177_v43 = vor.u32 %v2635_v34, %v2176_v33  ;;  %v2677_v44 = vld [vmem:[#allocation5 + $0x398] sm:$0xf0] }
  0x55   : > { %1314 = vmatpush.bf16.msra.mxu2 %v2105_v6  ;;  %v2440_v45 = vld [vmem:[#allocation5 + $0x450] sm:$0xf]  ;;  %v2701_v46 = vld [vmem:[#allocation5 + $0x458] sm:$0xf0]  ;;  %v2073_v47 = vor.u32 %v2607_v37, %v2070_v38  ;;  %v2580_v48 = vld [vmem:[#allocation5 + $0x94] sm:$0xf]  ;;  %v2345_v53 = vor.u32 %v2677_v44, %v2344_v41 }
  0x56   : > { %1327 = vmatpush.bf16.msra.mxu3 %v2201_v10  ;;  %v1962_v49 = vld [vmem:[#allocation5 + $0x9c] sm:$0xf0]  ;;  %v2604_v50 = vld [vmem:[#allocation5 + $0x154] sm:$0xf]  ;;  %v2441_v54 = vor.u32 %v2701_v46, %v2440_v45  ;;  %v2332_v55 = vld [vmem:[#allocation5 + $0x378] sm:$0xf] }
  0x57   : > { %1289 = vmatpush.bf16.msra.mxu0 %v1901_v16  ;;  %v2058_v51 = vld [vmem:[#allocation5 + $0x15c] sm:$0xf0]  ;;  %v291_v52 = vld [vmem:[%s3159_s13] sm:$0xff]  ;;  %v1965_v58 = vor.u32 %v2580_v48, %v1962_v49  ;;  %v2674_v59 = vld [vmem:[#allocation5 + $0x380] sm:$0xf0]  ;;  %s2559_s2 = sshll.u32 %s3072_s25, 3 }
  0x58   : > { %1302 = vmatpush.bf16.msra.mxu1 %v1997_v19  ;;  %v497_v56 = vunpack.c.l.b16 %v291_v52  ;;  %v498_v57 = vunpack.c.h.b16 %v291_v52  ;;  %v2428_v60 = vld [vmem:[#allocation5 + $0x438] sm:$0xf]  ;;  %v2698_v61 = vld [vmem:[#allocation5 + $0x440] sm:$0xf0]  ;;  %v2061_v62 = vor.u32 %v2604_v50, %v2058_v51  ;;  %v2577_v63 = vld [vmem:[#allocation5 + $0x7c] sm:$0xf]  ;;  %v2333_v5 = vor.u32 %v2674_v59, %v2332_v55  ;;  %s1770_s16 = scalar_lea.hbm %s3253_s5, %s2559_s2 }
  0x59   : > { %1315 = vmatpush.bf16.msra.mxu2 %v2093_v20  ;;  %v1950_v0 = vld [vmem:[#allocation5 + $0x84] sm:$0xf0]  ;;  %v2601_v3 = vld [vmem:[#allocation5 + $0x13c] sm:$0xf]  ;;  %v2429_v6 = vor.u32 %v2698_v61, %v2428_v60  ;;  %v2320_v7 = vld [vmem:[#allocation5 + $0x360] sm:$0xf] }
  0x5a   : > { %1328 = vmatpush.bf16.msra.mxu3 %v2189_v24  ;;  %v3174_v1 = vpack.c.b16 %v497_v56, %v497_v56  ;;  %v3176_v2 = vpack.c.b16 %v498_v57, %v498_v57  ;;  %v2046_v4 = vld [vmem:[#allocation5 + $0x144] sm:$0xf0]  ;;  %v292_v8 = vld [vmem:[%s3159_s13 + $0x8] sm:$0xff]  ;;  %v1953_v9 = vor.u32 %v2577_v63, %v1950_v0  ;;  %v2671_v10 = vld [vmem:[#allocation5 + $0x368] sm:$0xf0]  ;;  %s1885_s10 = sshll.u32 %s3155_s7, 3 }
  0x5b   : > { %1290 = vmatpush.bf16.msra.mxu0 %v1889_v31  ;;  %v2416_v11 = vld [vmem:[#allocation5 + $0x420] sm:$0xf]  ;;  %v2695_v12 = vld [vmem:[#allocation5 + $0x428] sm:$0xf0]  ;;  %v499_v13 = vunpack.c.l.b16 %v292_v8  ;;  %v500_v14 = vunpack.c.h.b16 %v292_v8  ;;  %v2049_v15 = vor.u32 %v2601_v3, %v2046_v4  ;;  %v2574_v16 = vld [vmem:[#allocation5 + $0x64] sm:$0xf]  ;;  %v2321_v22 = vor.u32 %v2671_v10, %v2320_v7 }
  0x5c   : > { %1303 = vmatpush.bf16.msra.mxu1 %v1985_v35  ;;  %v1938_v17 = vld [vmem:[#allocation5 + $0x6c] sm:$0xf0]  ;;  %v2598_v18 = vld [vmem:[#allocation5 + $0x124] sm:$0xf]  ;;  %v2417_v23 = vor.u32 %v2695_v12, %v2416_v11  ;;  %v2308_v24 = vld [vmem:[#allocation5 + $0x348] sm:$0xf] }
  0x5d   : > { %1316 = vmatpush.bf16.msra.mxu2 %v2081_v36  ;;  %v2034_v19 = vld [vmem:[#allocation5 + $0x12c] sm:$0xf0]  ;;  %v3181_v20 = vpack.c.b16 %v499_v13, %v499_v13  ;;  %v3183_v21 = vpack.c.b16 %v500_v14, %v500_v14  ;;  %v1941_v25 = vor.u32 %v2574_v16, %v1938_v17  ;;  %v2668_v26 = vld [vmem:[#allocation5 + $0x350] sm:$0xf0]  ;;  %v2404_v27 = vld [vmem:[#allocation5 + $0x408] sm:$0xf] }
  0x5e   : > { %1329 = vmatpush.bf16.msra.mxu3 %v2177_v43  ;;  %1291 = vmatmul.bf16.vlgmr.msra.gmra.mxu0 %v3174_v1  ;;  %v2692_v28 = vld [vmem:[#allocation5 + $0x410] sm:$0xf0]  ;;  %v2037_v29 = vor.u32 %v2598_v18, %v2034_v19  ;;  %v2571_v30 = vld [vmem:[#allocation5 + $0x4c] sm:$0xf]  ;;  %v1926_v31 = vld [vmem:[#allocation5 + $0x54] sm:$0xf0]  ;;  %v2309_v34 = vor.u32 %v2668_v26, %v2308_v24 }
  0x5f   : > { %1335 = vmatpush.bf16.msrb.mxu0 %v2357_v39  ;;  %1304 = vmatmul.bf16.vlgmr.msra.gmra.mxu1 %v3176_v2  ;;  %v2595_v32 = vld [vmem:[#allocation5 + $0x10c] sm:$0xf]  ;;  %v2022_v33 = vld [vmem:[#allocation5 + $0x114] sm:$0xf0]  ;;  %v2405_v35 = vor.u32 %v2692_v28, %v2404_v27  ;;  %v2296_v36 = vld [vmem:[#allocation5 + $0x330] sm:$0xf]  ;;  %v1929_v37 = vor.u32 %v2571_v30, %v1926_v31 }
  0x60   : > { %1348 = vmatpush.bf16.msrb.mxu1 %v2453_v40  ;;  %1317 = vmatmul.bf16.vlgmr.msra.gmra.mxu2 %v3181_v20  ;;  %v2665_v38 = vld [vmem:[#allocation5 + $0x338] sm:$0xf0]  ;;  %v2392_v39 = vld [vmem:[#allocation5 + $0x3f0] sm:$0xf]  ;;  %v2025_v41 = vor.u32 %v2595_v32, %v2022_v33  ;;  %v1914_v43 = vld [vmem:[#allocation5 + $0x3c] sm:$0xf0] }
  0x61   : > { %1361 = vmatpush.bf16.msrb.mxu2 %v1977_v42  ;;  %1330 = vmatmul.bf16.vlgmr.msra.gmra.mxu3 %v3183_v21  ;;  %v2689_v40 = vld [vmem:[#allocation5 + $0x3f8] sm:$0xf0]  ;;  %v2568_v42 = vld [vmem:[#allocation5 + $0x34] sm:$0xf]  ;;  %v2010_v45 = vld [vmem:[#allocation5 + $0xfc] sm:$0xf0]  ;;  %v2297_v46 = vor.u32 %v2665_v38, %v2296_v36 }
  0x62   : > { %1374 = vmatpush.bf16.msrb.mxu3 %v2073_v47  ;;  %v2592_v44 = vld [vmem:[#allocation5 + $0xf4] sm:$0xf]  ;;  %v2393_v47 = vor.u32 %v2689_v40, %v2392_v39  ;;  %v2284_v48 = vld [vmem:[#allocation5 + $0x318] sm:$0xf]  ;;  %v1917_v49 = vor.u32 %v2568_v42, %v1914_v43  ;;  %v2662_v50 = vld [vmem:[#allocation5 + $0x320] sm:$0xf0] }
  0x63   : > { %1336 = vmatpush.bf16.msrb.mxu0 %v2345_v53  ;;  %v2380_v51 = vld [vmem:[#allocation5 + $0x3d8] sm:$0xf]  ;;  %v2686_v52 = vld [vmem:[#allocation5 + $0x3e0] sm:$0xf0]  ;;  %v2013_v53 = vor.u32 %v2592_v44, %v2010_v45  ;;  %v1902_v55 = vld [vmem:[#allocation5 + $0x24] sm:$0xf0]  ;;  %v2285_v59 = vor.u32 %v2662_v50, %v2284_v48 }
  0x64   : > { %1349 = vmatpush.bf16.msrb.mxu1 %v2441_v54  ;;  %v2565_v54 = vld [vmem:[#allocation5 + $0x1c] sm:$0xf]  ;;  %v1998_v57 = vld [vmem:[#allocation5 + $0xe4] sm:$0xf0]  ;;  %v2381_v60 = vor.u32 %v2686_v52, %v2380_v51  ;;  %v2659_v61 = vld [vmem:[#allocation5 + $0x308] sm:$0xf0] }
  0x65   : > { %1362 = vmatpush.bf16.msrb.mxu2 %v1965_v58  ;;  %v2589_v56 = vld [vmem:[#allocation5 + $0xdc] sm:$0xf]  ;;  %v2272_v58 = vld [vmem:[#allocation5 + $0x300] sm:$0xf]  ;;  %v1905_v0 = vor.u32 %v2565_v54, %v1902_v55  ;;  %v2683_v3 = vld [vmem:[#allocation5 + $0x3c8] sm:$0xf0] }
  0x66   : > { %1375 = vmatpush.bf16.msrb.mxu3 %v2061_v62  ;;  %v2368_v62 = vld [vmem:[#allocation5 + $0x3c0] sm:$0xf]  ;;  %v2562_v4 = vld [vmem:[#allocation5 + $0x4] sm:$0xf]  ;;  %v2631_v7 = vld [vmem:[#allocation5 + $0x22c] sm:$0xf]  ;;  %v2273_v14 = vor.u32 %v2659_v61, %v2272_v58 }
  0x67   : > { %1337 = vmatpush.bf16.msrb.mxu0 %v2333_v5  ;;  %v293_v63 = vld [vmem:[%s3159_s13 + $0x10] sm:$0xff]  ;;  %v1890_v5 = vld [vmem:[#allocation5 + $0xc] sm:$0xf0]  ;;  %v2679_v11 = vld [vmem:[#allocation5 + $0x3ac] sm:$0xf]  ;;  %s290_s17 = scalar_lea.vmem [#allocation10], %s1885_s10 }
  0x68   : > { %1350 = vmatpush.bf16.msrb.mxu1 %v2429_v6  ;;  %v2001_v6 = vor.u32 %v2589_v56, %v1998_v57  ;;  %v2166_v8 = vld [vmem:[#allocation5 + $0x234] sm:$0xf0]  ;;  %v501_v13 = vunpack.c.l.b16 %v293_v63  ;;  %v2586_v16 = vld [vmem:[#allocation5 + $0xc4] sm:$0xf]  ;;  %v1986_v17 = vld [vmem:[#allocation5 + $0xcc] sm:$0xf0]  ;;  %v502_v18 = vunpack.c.h.b16 %v293_v63  ;;  %v1893_v19 = vor.u32 %v2562_v4, %v1890_v5 }
  0x69   : > { %1363 = vmatpush.bf16.msrb.mxu2 %v1953_v9  ;;  %v2655_v9 = vld [vmem:[#allocation5 + $0x2ec] sm:$0xf]  ;;  %v2262_v10 = vld [vmem:[#allocation5 + $0x2f4] sm:$0xf0]  ;;  %v2628_v27 = vld [vmem:[#allocation5 + $0x214] sm:$0xf]  ;;  %v1989_v30 = vor.u32 %v2586_v16, %v1986_v17 }
  0x6a   : > { %1376 = vmatpush.bf16.msrb.mxu3 %v2049_v15  ;;  %v2358_v12 = vld [vmem:[#allocation5 + $0x3b4] sm:$0xf0]  ;;  %v2369_v15 = vor.u32 %v2683_v3, %v2368_v62  ;;  %v2154_v28 = vld [vmem:[#allocation5 + $0x21c] sm:$0xf0]  ;;  %v3188_v31 = vpack.c.b16 %v501_v13, %v501_v13  ;;  %v2676_v33 = vld [vmem:[#allocation5 + $0x394] sm:$0xf]  ;;  %v3190_v36 = vpack.c.b16 %v502_v18, %v502_v18 }
  0x6b   : > { %1338 = vmatpush.bf16.msrb.mxu0 %v2321_v22  ;;  %v2169_v22 = vor.u32 %v2631_v7, %v2166_v8  ;;  %v2454_v24 = vld [vmem:[#allocation5 + $0x474] sm:$0xf0]  ;;  %v2361_v26 = vor.u32 %v2679_v11, %v2358_v12  ;;  %v2250_v32 = vld [vmem:[#allocation5 + $0x2dc] sm:$0xf0]  ;;  %v2700_v38 = vld [vmem:[#allocation5 + $0x454] sm:$0xf] }
  0x6c   : > { %1351 = vmatpush.bf16.msrb.mxu1 %v2417_v23  ;;  %v2703_v23 = vld [vmem:[#allocation5 + $0x46c] sm:$0xf]  ;;  %v2442_v39 = vld [vmem:[#allocation5 + $0x45c] sm:$0xf0]  ;;  %v2625_v42 = vld [vmem:[#allocation5 + $0x1fc] sm:$0xf] }
  0x6d   : > { %1364 = vmatpush.bf16.msrb.mxu2 %v1941_v25  ;;  %v2265_v25 = vor.u32 %v2655_v9, %v2262_v10  ;;  %v2142_v43 = vld [vmem:[#allocation5 + $0x204] sm:$0xf0]  ;;  %v2649_v44 = vld [vmem:[#allocation5 + $0x2bc] sm:$0xf]  ;;  %v2445_v48 = vor.u32 %v2700_v38, %v2442_v39  ;;  %v2622_v54 = vld [vmem:[#allocation5 + $0x1e4] sm:$0xf] }
  0x6e   : > { %1377 = vmatpush.bf16.msrb.mxu3 %v2037_v29  ;;  %v2652_v29 = vld [vmem:[#allocation5 + $0x2d4] sm:$0xf]  ;;  %v2238_v45 = vld [vmem:[#allocation5 + $0x2c4] sm:$0xf0]  ;;  %v2697_v50 = vld [vmem:[#allocation5 + $0x43c] sm:$0xf] }
  0x6f   : > { %1339 = vmatpush.bf16.msrb.mxu0 %v2309_v34  ;;  %v2346_v34 = vld [vmem:[#allocation5 + $0x39c] sm:$0xf0]  ;;  %v2253_v40 = vor.u32 %v2652_v29, %v2250_v32  ;;  %v2430_v51 = vld [vmem:[#allocation5 + $0x444] sm:$0xf0]  ;;  %v2241_v52 = vor.u32 %v2649_v44, %v2238_v45  ;;  %v2130_v55 = vld [vmem:[#allocation5 + $0x1ec] sm:$0xf0] }
  0x70   : > { %1352 = vmatpush.bf16.msrb.mxu1 %v2405_v35  ;;  %v2457_v35 = vor.u32 %v2703_v23, %v2454_v24  ;;  %v2646_v56 = vld [vmem:[#allocation5 + $0x2a4] sm:$0xf]  ;;  %v2226_v57 = vld [vmem:[#allocation5 + $0x2ac] sm:$0xf0]  ;;  %v2133_v61 = vor.u32 %v2622_v54, %v2130_v55  ;;  %v2118_v5 = vld [vmem:[#allocation5 + $0x1d4] sm:$0xf0] }
  0x71   : > { %1365 = vmatpush.bf16.msrb.mxu2 %v1929_v37  ;;  %v2157_v37 = vor.u32 %v2628_v27, %v2154_v28  ;;  %v2670_v58 = vld [vmem:[#allocation5 + $0x364] sm:$0xf]  ;;  %v2418_v63 = vld [vmem:[#allocation5 + $0x42c] sm:$0xf0]  ;;  %v2229_v3 = vor.u32 %v2646_v56, %v2226_v57  ;;  %v2214_v7 = vld [vmem:[#allocation5 + $0x294] sm:$0xf0] }
  0x72   : > { %1378 = vmatpush.bf16.msrb.mxu3 %v2025_v41  ;;  %v2349_v41 = vor.u32 %v2676_v33, %v2346_v34  ;;  %v2694_v62 = vld [vmem:[#allocation5 + $0x424] sm:$0xf]  ;;  %v2667_v8 = vld [vmem:[#allocation5 + $0x34c] sm:$0xf]  ;;  %v2310_v9 = vld [vmem:[#allocation5 + $0x354] sm:$0xf0] }
  0x73   : > { %1340 = vmatpush.bf16.msrb.mxu0 %v2297_v46  ;;  %v2673_v46 = vld [vmem:[#allocation5 + $0x37c] sm:$0xf]  ;;  %v2421_v10 = vor.u32 %v2694_v62, %v2418_v63  ;;  %v2691_v12 = vld [vmem:[#allocation5 + $0x40c] sm:$0xf]  ;;  %v2406_v13 = vld [vmem:[#allocation5 + $0x414] sm:$0xf0] }
  0x74   : > { %1353 = vmatpush.bf16.msrb.mxu1 %v2393_v47  ;;  %v2334_v47 = vld [vmem:[#allocation5 + $0x384] sm:$0xf0]  ;;  %v2616_v16 = vld [vmem:[#allocation5 + $0x1b4] sm:$0xf]  ;;  %v2106_v17 = vld [vmem:[#allocation5 + $0x1bc] sm:$0xf0]  ;;  %v2409_v24 = vor.u32 %v2691_v12, %v2406_v13 }
  0x75   : > { %1366 = vmatpush.bf16.msrb.mxu2 %v1917_v49  ;;  %v2145_v49 = vor.u32 %v2625_v42, %v2142_v43  ;;  %v2640_v18 = vld [vmem:[#allocation5 + $0x274] sm:$0xf]  ;;  %v2298_v23 = vld [vmem:[#allocation5 + $0x33c] sm:$0xf0]  ;;  %v2094_v32 = vld [vmem:[#allocation5 + $0x1a4] sm:$0xf0] }
  0x76   : > { %1379 = vmatpush.bf16.msrb.mxu3 %v2013_v53  ;;  %v2337_v53 = vor.u32 %v2673_v46, %v2334_v47  ;;  %v2394_v27 = vld [vmem:[#allocation5 + $0x3fc] sm:$0xf0]  ;;  %v2637_v33 = vld [vmem:[#allocation5 + $0x25c] sm:$0xf]  ;;  %v2190_v34 = vld [vmem:[#allocation5 + $0x264] sm:$0xf0] }
  0x77   : > { %1341 = vmatpush.bf16.msrb.mxu0 %v2285_v59  ;;  %v2322_v59 = vld [vmem:[#allocation5 + $0x36c] sm:$0xf0]  ;;  %v2610_v42 = vld [vmem:[#allocation5 + $0x184] sm:$0xf]  ;;  %v2193_v43 = vor.u32 %v2637_v33, %v2190_v34  ;;  %v2609_v54 = vld [vmem:[#allocation5 + $0x178] sm:$0xf0] }
  0x78   : > { %1354 = vmatpush.bf16.msrb.mxu1 %v2381_v60  ;;  %v2433_v60 = vor.u32 %v2697_v50, %v2430_v51  ;;  %v2325_v4 = vor.u32 %v2670_v58, %v2322_v59  ;;  %v2082_v45 = vld [vmem:[#allocation5 + $0x18c] sm:$0xf0]  ;;  %v2634_v46 = vld [vmem:[#allocation5 + $0x244] sm:$0xf]  ;;  %v2633_v63 = vld [vmem:[#allocation5 + $0x238] sm:$0xf0] }
  0x79   : > { %1367 = vmatpush.bf16.msrb.mxu2 %v1905_v0  ;;  %v2619_v0 = vld [vmem:[#allocation5 + $0x1cc] sm:$0xf]  ;;  %v2178_v47 = vld [vmem:[#allocation5 + $0x24c] sm:$0xf0]  ;;  %v2085_v55 = vor.u32 %v2610_v42, %v2082_v45  ;;  %v2682_v56 = vld [vmem:[#allocation5 + $0x3c4] sm:$0xf] }
  0x7a   : > { %1380 = vmatpush.bf16.msrb.mxu3 %v2001_v6  ;;  %v2643_v6 = vld [vmem:[#allocation5 + $0x28c] sm:$0xf]  ;;  %v2121_v11 = vor.u32 %v2619_v0, %v2118_v5  ;;  %v1980_v50 = vld [vmem:[#allocation5 + $0xb0] sm:$0xf]  ;;  %v2181_v58 = vor.u32 %v2634_v46, %v2178_v47  ;;  %v1968_v5 = vld [vmem:[#allocation5 + $0x98] sm:$0xf] }
  0x7b   : > { %1342 = vmatpush.bf16.msrb.mxu0 %v2273_v14  ;;  %v2217_v14 = vor.u32 %v2643_v6, %v2214_v7  ;;  %v2370_v57 = vld [vmem:[#allocation5 + $0x3cc] sm:$0xf0]  ;;  %v2582_v6 = vld [vmem:[#allocation5 + $0xa0] sm:$0xf0]  ;;  %v2064_v7 = vld [vmem:[#allocation5 + $0x158] sm:$0xf] }
  0x7c   : > { %1355 = vmatpush.bf16.msrb.mxu1 %v2369_v15  ;;  %v2313_v15 = vor.u32 %v2667_v8, %v2310_v9  ;;  %v2268_v0 = vld [vmem:[#allocation5 + $0x2f0] sm:$0xf]  ;;  %v2606_v8 = vld [vmem:[#allocation5 + $0x160] sm:$0xf0]  ;;  %v1969_v12 = vor.u32 %v2582_v6, %v1968_v5  ;;  %v2576_v33 = vld [vmem:[#allocation5 + $0x70] sm:$0xf0] }
  0x7d   : > { %1368 = vmatpush.bf16.msrb.mxu2 %v1893_v19  ;;  %v2202_v19 = vld [vmem:[#allocation5 + $0x27c] sm:$0xf0]  ;;  %v2630_v13 = vld [vmem:[#allocation5 + $0x220] sm:$0xf0]  ;;  %v2040_v34 = vld [vmem:[#allocation5 + $0x128] sm:$0xf] }
  0x7e   : > { %1381 = vmatpush.bf16.msrb.mxu3 %v1989_v30  ;;  %1343 = vmatmul.bf16.vlgmr.msrb.gmra.mxu0 %v3188_v31  ;;  %v2205_v28 = vor.u32 %v2640_v18, %v2202_v19  ;;  %v2613_v30 = vld [vmem:[#allocation5 + $0x19c] sm:$0xf]  ;;  %v2579_v18 = vld [vmem:[#allocation5 + $0x88] sm:$0xf0]  ;;  %v2052_v19 = vld [vmem:[#allocation5 + $0x140] sm:$0xf] }
  0x7f   : > { %1387 = vmatpush.bf16.msra.mxu0 %v2169_v22  ;;  %1356 = vmatmul.bf16.vlgmr.msrb.gmra.mxu1 %v3190_v36  ;;  %v2664_v22 = vld [vmem:[#allocation5 + $0x334] sm:$0xf]  ;;  %v2097_v39 = vor.u32 %v2613_v30, %v2094_v32  ;;  %v1944_v32 = vld [vmem:[#allocation5 + $0x68] sm:$0xf]  ;;  %v1932_v45 = vld [vmem:[#allocation5 + $0x50] sm:$0xf] }
  0x80   : > { %1400 = vmatpush.bf16.msra.mxu1 %v2265_v25  ;;  %1369 = vmatmul.bf16.vlgmr.msrb.gmra.mxu2 %v3174_v1  ;;  %v2109_v25 = vor.u32 %v2616_v16, %v2106_v17  ;;  %v2301_v29 = vor.u32 %v2664_v22, %v2298_v23  ;;  %v2065_v16 = vor.u32 %v2606_v8, %v2064_v7  ;;  %v1956_v17 = vld [vmem:[#allocation5 + $0x80] sm:$0xf]  ;;  %v2603_v22 = vld [vmem:[#allocation5 + $0x148] sm:$0xf0]  ;;  %v2232_v42 = vld [vmem:[#allocation5 + $0x2a8] sm:$0xf] }
  0x81   : > { %1413 = vmatpush.bf16.msra.mxu2 %v2361_v26  ;;  %1382 = vmatmul.bf16.vlgmr.msrb.gmra.mxu3 %v3176_v2  ;;  %v2688_v26 = vld [vmem:[#allocation5 + $0x3f4] sm:$0xf]  ;;  %v2053_v30 = vor.u32 %v2603_v22, %v2052_v19  ;;  %v2573_v46 = vld [vmem:[#allocation5 + $0x58] sm:$0xf0]  ;;  %v2028_v47 = vld [vmem:[#allocation5 + $0x110] sm:$0xf] }
  0x82   : > { %1426 = vmatpush.bf16.msra.mxu3 %v2457_v35  ;;  %v2661_v35 = vld [vmem:[#allocation5 + $0x31c] sm:$0xf]  ;;  %v2397_v38 = vor.u32 %v2688_v26, %v2394_v27  ;;  %v1957_v26 = vor.u32 %v2579_v18, %v1956_v17  ;;  %v2627_v27 = vld [vmem:[#allocation5 + $0x208] sm:$0xf0]  ;;  %v2642_v5 = vld [vmem:[#allocation5 + $0x280] sm:$0xf0] }
  0x83   : > { %1388 = vmatpush.bf16.msra.mxu0 %v2157_v37  ;;  %v2286_v37 = vld [vmem:[#allocation5 + $0x324] sm:$0xf0]  ;;  %v1908_v7 = vld [vmem:[#allocation5 + $0x20] sm:$0xf]  ;;  %v2567_v8 = vld [vmem:[#allocation5 + $0x28] sm:$0xf0] }
  0x84   : > { %1401 = vmatpush.bf16.msra.mxu1 %v2253_v40  ;;  %v2685_v40 = vld [vmem:[#allocation5 + $0x3dc] sm:$0xf]  ;;  %v2289_v44 = vor.u32 %v2661_v35, %v2286_v37  ;;  %v2600_v35 = vld [vmem:[#allocation5 + $0x130] sm:$0xf0]  ;;  %v2639_v17 = vld [vmem:[#allocation5 + $0x268] sm:$0xf0] }
  0x85   : > { %1414 = vmatpush.bf16.msra.mxu2 %v2349_v41  ;;  %v2382_v41 = vld [vmem:[#allocation5 + $0x3e4] sm:$0xf0]  ;;  %v2564_v22 = vld [vmem:[#allocation5 + $0x10] sm:$0xf0]  ;;  %s1772_s22 = sshll.u32 %s290_s17, 4  ;;  %s1774_s23 = sshll.u32 %s1770_s16, 4  ;;  %s1773_s22 = int_to_ptr.vmem [resolvable:$true] %s1772_s22  ;;  %s1775_s23 = int_to_ptr.hbm [resolvable:$true] %s1774_s23 }
  0x86   : > { %1427 = vmatpush.bf16.msra.mxu3 %v2445_v48  ;;  %v2658_v48 = vld [vmem:[#allocation5 + $0x304] sm:$0xf]  ;;  %v2385_v51 = vor.u32 %v2685_v40, %v2382_v41  ;;  %v1945_v40 = vor.u32 %v2576_v33, %v1944_v32  ;;  %v2624_v41 = vld [vmem:[#allocation5 + $0x1f0] sm:$0xf0]  ;;  %v1896_v19 = vld [vmem:[#allocation5 + $0x8] sm:$0xf] }
  0x87   : > { %1389 = vmatpush.bf16.msra.mxu0 %v2145_v49  ;;  %v2274_v49 = vld [vmem:[#allocation5 + $0x30c] sm:$0xf0]  ;;  %v1897_v32 = vor.u32 %v2564_v22, %v1896_v19  ;;  %v2088_v33 = vld [vmem:[#allocation5 + $0x188] sm:$0xf]  ;;  %v2660_v19 = vld [vmem:[#allocation5 + $0x310] sm:$0xf0] }
  0x88   : > { %1402 = vmatpush.bf16.msra.mxu1 %v2241_v52  ;;  %v2585_v52 = vld [vmem:[#allocation5 + $0xb8] sm:$0xf0]  ;;  %v2277_v59 = vor.u32 %v2658_v48, %v2274_v49  ;;  %v2376_v22 = vld [vmem:[#allocation5 + $0x3c8] sm:$0xf]  ;;  %s1760_s25 = scalar_lea.sflag [#allocation4], %s3155_s7  ;;  %s2949_s27 = sshra.s32 %s1775_s23, 4  ;;  %s2950_s27 = int_to_ptr.hbm [resolvable:$true] %s2949_s27 }
  0x89   : > { %1415 = vmatpush.bf16.msra.mxu2 %v2337_v53  ;;  %v2076_v53 = vld [vmem:[#allocation5 + $0x170] sm:$0xf]  ;;  %v2597_v48 = vld [vmem:[#allocation5 + $0x118] sm:$0xf0]  ;;  %s2951_s28 = scalar_lea.hbm %s2950_s27, 8  ;;  %s2955_s1 = scalar_lea.hbm %s3253_s5, 16 }
  0x8a   : > { %1428 = vmatpush.bf16.msra.mxu3 %v2433_v60  ;;  %v2172_v60 = vld [vmem:[#allocation5 + $0x230] sm:$0xf]  ;;  %v2077_v62 = vor.u32 %v2609_v54, %v2076_v53  ;;  %v2621_v53 = vld [vmem:[#allocation5 + $0x1d8] sm:$0xf0]  ;;  %p2952_p1 = scmp.ne.s32.totalorder %s2950_s27, %s2951_s28  ;;  %p2956_p13 = scmp.lt.s32.totalorder %s2950_s27, %s3253_s5 }
  0x8b   : > { %1390 = vmatpush.bf16.msra.mxu0 %v2133_v61  ;;  %v1981_v61 = vor.u32 %v2585_v52, %v1980_v50  ;;  %v2173_v9 = vor.u32 %v2633_v63, %v2172_v60  ;;  %v1933_v52 = vor.u32 %v2573_v46, %v1932_v45  ;;  %v2220_v54 = vld [vmem:[#allocation5 + $0x290] sm:$0xf]  ;;  %v2594_v60 = vld [vmem:[#allocation5 + $0x100] sm:$0xf0]  ;;  %v2112_v63 = vld [vmem:[#allocation5 + $0x1b8] sm:$0xf]  ;;  %p2957_p8 = scmp.lt.s32.totalorder %s2955_s1, %s2951_s28 }
  0x8c   : > { %1403 = vmatpush.bf16.msra.mxu1 %v2229_v3  ;;  %v2657_v3 = vld [vmem:[#allocation5 + $0x2f8] sm:$0xf0]  ;;  %p2953_p3 = pnand %p2952_p1, %p3124_p0 }
  0x8d   : > { %1416 = vmatpush.bf16.msra.mxu2 %v2325_v4  ;;  %v2373_v4 = vor.u32 %v2682_v56, %v2370_v57  ;;  %v2029_v56 = vor.u32 %v2597_v48, %v2028_v47  ;;  %v1920_v57 = vld [vmem:[#allocation5 + $0x38] sm:$0xf]  ;;  %v2713_v48 = vld [vmem:[#allocation8 + $0x38] sm:$0xff]  ;;  %p2958_p7 = por %p2957_p8, %p2956_p13 }
  0x8e   : > { %1429 = vmatpush.bf16.msra.mxu3 %v2421_v10  ;;  %v2269_v10 = vor.u32 %v2657_v3, %v2268_v0  ;;  %v2618_v3 = vld [vmem:[#allocation5 + $0x1c0] sm:$0xf0]  ;;  %p2954_p5 = pneg %p2953_p3 }
  0x8f   : > { %1391 = vmatpush.bf16.msra.mxu0 %v2121_v11  ;;  %v2160_v11 = vld [vmem:[#allocation5 + $0x218] sm:$0xf] }
  0x90   : > { %1404 = vmatpush.bf16.msra.mxu1 %v2217_v14  ;;  %v2256_v14 = vld [vmem:[#allocation5 + $0x2d8] sm:$0xf]  ;;  %v2161_v23 = vor.u32 %v2630_v13, %v2160_v11  ;;  %v2113_v11 = vor.u32 %v2618_v3, %v2112_v63  ;;  %v2100_v13 = vld [vmem:[#allocation5 + $0x1a0] sm:$0xf]  ;;  %v2412_v63 = vld [vmem:[#allocation5 + $0x410] sm:$0xf]  ;;  %p2959_p9 = pnand %p2958_p7, %p2954_p5 }
  0x91   : > { %1417 = vmatpush.bf16.msra.mxu2 %v2313_v15  ;;  %v2654_v15 = vld [vmem:[#allocation5 + $0x2e0] sm:$0xf0] }
  0x92   : > { %1430 = vmatpush.bf16.msra.mxu3 %v2409_v24  ;;  %v2257_v24 = vor.u32 %v2654_v15, %v2256_v14  ;;  %v1909_v14 = vor.u32 %v2567_v8, %v1908_v7  ;;  %v2615_v15 = vld [vmem:[#allocation5 + $0x1a8] sm:$0xf0]  ;;  %v2400_v7 = vld [vmem:[#allocation5 + $0x3f8] sm:$0xf]  ;;  %v2690_v8 = vld [vmem:[#allocation5 + $0x400] sm:$0xf0] }
  0x93   : > { %1392 = vmatpush.bf16.msra.mxu0 %v2109_v25  ;;  %v2148_v25 = vld [vmem:[#allocation5 + $0x200] sm:$0xf] }
  0x94   : > { %1405 = vmatpush.bf16.msra.mxu1 %v2205_v28  ;;  %v2244_v28 = vld [vmem:[#allocation5 + $0x2c0] sm:$0xf]  ;;  %v2149_v37 = vor.u32 %v2627_v27, %v2148_v25  ;;  %v2364_v25 = vld [vmem:[#allocation5 + $0x3b0] sm:$0xf] }
  0x95   : > { %1418 = vmatpush.bf16.msra.mxu2 %v2301_v29  ;;  %v2651_v29 = vld [vmem:[#allocation5 + $0x2c8] sm:$0xf0]  ;;  %v2460_v27 = vld [vmem:[#allocation5 + $0x470] sm:$0xf] }
  0x96   : > { %1431 = vmatpush.bf16.msra.mxu3 %v2397_v38  ;;  %v2245_v38 = vor.u32 %v2651_v29, %v2244_v28  ;;  %v2705_v28 = vld [vmem:[#allocation5 + $0x478] sm:$0xf0]  ;;  %v2101_v29 = vor.u32 %v2615_v15, %v2100_v13  ;;  %v2388_v13 = vld [vmem:[#allocation5 + $0x3e0] sm:$0xf] }
  0x97   : > { %1393 = vmatpush.bf16.msra.mxu0 %v2097_v39  ;;  %v2136_v39 = vld [vmem:[#allocation5 + $0x1e8] sm:$0xf]  ;;  %v2709_v15 = vld [vmem:[#allocation8 + $0x18] sm:$0xff] }
  0x98   : > { %1406 = vmatpush.bf16.msra.mxu1 %v2193_v43  ;;  %v2648_v43 = vld [vmem:[#allocation5 + $0x2b0] sm:$0xf0]  ;;  %v2137_v49 = vor.u32 %v2624_v41, %v2136_v39  ;;  %v2352_v41 = vld [vmem:[#allocation5 + $0x398] sm:$0xf] }
  0x99   : > { %1419 = vmatpush.bf16.msra.mxu2 %v2289_v44  ;;  %v2041_v44 = vor.u32 %v2600_v35, %v2040_v34  ;;  %v2233_v50 = vor.u32 %v2648_v43, %v2232_v42  ;;  %v2612_v34 = vld [vmem:[#allocation5 + $0x190] sm:$0xf0]  ;;  %v2678_v42 = vld [vmem:[#allocation5 + $0x3a0] sm:$0xf0]  ;;  %v2448_v43 = vld [vmem:[#allocation5 + $0x458] sm:$0xf] }
  0x9a   : > { %1432 = vmatpush.bf16.msra.mxu3 %v2385_v51  ;;  %v2124_v51 = vld [vmem:[#allocation5 + $0x1d0] sm:$0xf]  ;;  %v2636_v39 = vld [vmem:[#allocation5 + $0x250] sm:$0xf0]  ;;  %v2089_v45 = vor.u32 %v2612_v34, %v2088_v33  ;;  %v2353_v47 = vor.u32 %v2678_v42, %v2352_v41  ;;  %v3206_v33 = vld [vmem:[#allocation7] sm:$0x7] }
  0x9b   : > { %1394 = vmatpush.bf16.msra.mxu0 %v2085_v55  ;;  %v2645_v55 = vld [vmem:[#allocation5 + $0x298] sm:$0xf0]  ;;  %v2720_v34 = vld [vmem:[#allocation8 + $0x70] sm:$0xff]  ;;  %v2718_v41 = vld [vmem:[#allocation8 + $0x60] sm:$0xff] }
  0x9c   : > { %1407 = vmatpush.bf16.msra.mxu1 %v2181_v58  ;;  %v2570_v58 = vld [vmem:[#allocation5 + $0x40] sm:$0xf0] }
  0x9d   : > { %1420 = vmatpush.bf16.msra.mxu2 %v2277_v59  ;;  %v2016_v59 = vld [vmem:[#allocation5 + $0xf8] sm:$0xf]  ;;  %v1921_v0 = vor.u32 %v2570_v58, %v1920_v57  ;;  %v2328_v57 = vld [vmem:[#allocation5 + $0x368] sm:$0xf]  ;;  %v2672_v58 = vld [vmem:[#allocation5 + $0x370] sm:$0xf0] }
  0x9e   : > { %1433 = vmatpush.bf16.msra.mxu3 %v2373_v4  ;;  %1395 = vmatmul.bf16.vlgmr.msra.gmra.mxu0 %v3181_v20  ;;  %v2208_v4 = vld [vmem:[#allocation5 + $0x278] sm:$0xf]  ;;  %v2017_v6 = vor.u32 %v2594_v60, %v2016_v59  ;;  %v2424_v59 = vld [vmem:[#allocation5 + $0x428] sm:$0xf]  ;;  %v2696_v60 = vld [vmem:[#allocation5 + $0x430] sm:$0xf0] }
  0x9f   : > { %1439 = vmatpush.bf16.msrb.mxu0 %v1981_v61  ;;  %1408 = vmatmul.bf16.vlgmr.msra.gmra.mxu1 %v3183_v21  ;;  %v2125_v61 = vor.u32 %v2621_v53, %v2124_v51  ;;  %v2675_v51 = vld [vmem:[#allocation5 + $0x388] sm:$0xf0] }
  0xa0   : > { %1452 = vmatpush.bf16.msrb.mxu1 %v2077_v62  ;;  %1421 = vmatmul.bf16.vlgmr.msra.gmra.mxu2 %v3188_v31  ;;  %v2221_v62 = vor.u32 %v2645_v55, %v2220_v54  ;;  %v2699_v53 = vld [vmem:[#allocation5 + $0x448] sm:$0xf0]  ;;  %v2712_v55 = vld [vmem:[#allocation8 + $0x30] sm:$0xff] }
  0xa1   : > { %1465 = vmatpush.bf16.msrb.mxu2 %v2173_v9  ;;  %1434 = vmatmul.bf16.vlgmr.msra.gmra.mxu3 %v3190_v36  ;;  %v2004_v9 = vld [vmem:[#allocation5 + $0xe0] sm:$0xf] }
  0xa2   : > { %1478 = vmatpush.bf16.msrb.mxu3 %v2269_v10  ;;  %v2591_v10 = vld [vmem:[#allocation5 + $0xe8] sm:$0xf0] }
  0xa3   : > { %1440 = vmatpush.bf16.msrb.mxu0 %v1969_v12  ;;  %v2209_v12 = vor.u32 %v2642_v5, %v2208_v4  ;;  %v2005_v18 = vor.u32 %v2591_v10, %v2004_v9  ;;  %v2304_v5 = vld [vmem:[#allocation5 + $0x338] sm:$0xf]  ;;  %v2401_v10 = vor.u32 %v2690_v8, %v2400_v7  ;;  %v2727_v8 = vld [vmem:[#allocation8 + $0xa8] sm:$0xff] }
  0xa4   : > { %1453 = vmatpush.bf16.msrb.mxu1 %v2065_v16  ;;  %v2196_v16 = vld [vmem:[#allocation5 + $0x260] sm:$0xf] }
  0xa5   : > { %1466 = vmatpush.bf16.msrb.mxu2 %v2161_v23  ;;  %v1992_v23 = vld [vmem:[#allocation5 + $0xc8] sm:$0xf] }
  0xa6   : > { %1479 = vmatpush.bf16.msrb.mxu3 %v2257_v24  ;;  %v2588_v24 = vld [vmem:[#allocation5 + $0xd0] sm:$0xf0] }
  0xa7   : > { %1441 = vmatpush.bf16.msrb.mxu0 %v1957_v26  ;;  %v2681_v26 = vld [vmem:[#allocation5 + $0x3b8] sm:$0xf0]  ;;  %v1993_v35 = vor.u32 %v2588_v24, %v1992_v23  ;;  %v2684_v23 = vld [vmem:[#allocation5 + $0x3d0] sm:$0xf0] }
  0xa8   : > { %1454 = vmatpush.bf16.msrb.mxu1 %v2053_v30  ;;  %v2197_v30 = vor.u32 %v2639_v17, %v2196_v16 }
  0xa9   : > { %1467 = vmatpush.bf16.msrb.mxu2 %v2149_v37  ;;  %v2365_v37 = vor.u32 %v2681_v26, %v2364_v25  ;;  %v2708_v25 = vld [vmem:[#allocation8 + $0x10] sm:$0xff]  ;;  %v2377_v26 = vor.u32 %v2684_v23, %v2376_v22  ;;  %v2723_v22 = vld [vmem:[#allocation8 + $0x88] sm:$0xff] }
  0xaa   : > { %1480 = vmatpush.bf16.msrb.mxu3 %v2245_v38  ;;  %v2184_v38 = vld [vmem:[#allocation5 + $0x248] sm:$0xf] }
  0xab   : > { %1442 = vmatpush.bf16.msrb.mxu0 %v1945_v40  ;;  %v2461_v40 = vor.u32 %v2705_v28, %v2460_v27  ;;  %v2185_v46 = vor.u32 %v2636_v39, %v2184_v38  ;;  %v2707_v27 = vld [vmem:[#allocation8 + $0x8] sm:$0xff] }
  0xac   : > { %1455 = vmatpush.bf16.msrb.mxu1 %v2041_v44  ;;  %v2702_v44 = vld [vmem:[#allocation5 + $0x460] sm:$0xf0]  ;;  %v2719_v39 = vld [vmem:[#allocation8 + $0x68] sm:$0xff] }
  0xad   : > { %1468 = vmatpush.bf16.msrb.mxu2 %v2137_v49  ;;  %v2449_v49 = vor.u32 %v2702_v44, %v2448_v43  ;;  %v2717_v43 = vld [vmem:[#allocation8 + $0x58] sm:$0xff] }
  0xae   : > { %1481 = vmatpush.bf16.msrb.mxu3 %v2233_v50  ;;  %v2340_v50 = vld [vmem:[#allocation5 + $0x380] sm:$0xf] }
  0xaf   : > { %1443 = vmatpush.bf16.msrb.mxu0 %v1933_v52  ;;  %v2436_v52 = vld [vmem:[#allocation5 + $0x440] sm:$0xf]  ;;  %v2341_v54 = vor.u32 %v2675_v51, %v2340_v50 }
  0xb0   : > { %1456 = vmatpush.bf16.msrb.mxu1 %v2029_v56  ;;  %v2437_v56 = vor.u32 %v2699_v53, %v2436_v52 }
  0xb1   : > { %1469 = vmatpush.bf16.msrb.mxu2 %v2125_v61  ;;  %v2316_v61 = vld [vmem:[#allocation5 + $0x350] sm:$0xf] }
  0xb2   : > { %1482 = vmatpush.bf16.msrb.mxu3 %v2221_v62  ;;  %v2669_v62 = vld [vmem:[#allocation5 + $0x358] sm:$0xf0] }
  0xb3   : > { %1444 = vmatpush.bf16.msrb.mxu0 %v1921_v0  ;;  %v2693_v0 = vld [vmem:[#allocation5 + $0x418] sm:$0xf0]  ;;  %v2317_v3 = vor.u32 %v2669_v62, %v2316_v61 }
  0xb4   : > { %1457 = vmatpush.bf16.msrb.mxu1 %v2017_v6  ;;  %v2413_v4 = vor.u32 %v2693_v0, %v2412_v63  ;;  %v2666_v6 = vld [vmem:[#allocation5 + $0x340] sm:$0xf0] }
  0xb5   : > { %1470 = vmatpush.bf16.msrb.mxu2 %v2113_v11  ;;  %v2305_v9 = vor.u32 %v2666_v6, %v2304_v5  ;;  %v2292_v11 = vld [vmem:[#allocation5 + $0x320] sm:$0xf]  ;;  %v2728_v6 = vld [vmem:[#allocation8 + $0xb0] sm:$0xff] }
  0xb6   : > { %1483 = vmatpush.bf16.msrb.mxu3 %v2209_v12  ;;  %v2663_v12 = vld [vmem:[#allocation5 + $0x328] sm:$0xf0]  ;;  %v2729_v5 = vld [vmem:[#allocation8 + $0xb8] sm:$0xff] }
  0xb7   : > { %1445 = vmatpush.bf16.msrb.mxu0 %v1909_v14  ;;  %v2687_v14 = vld [vmem:[#allocation5 + $0x3e8] sm:$0xf0]  ;;  %v2293_v16 = vor.u32 %v2663_v12, %v2292_v11 }
  0xb8   : > { %1458 = vmatpush.bf16.msrb.mxu1 %v2005_v18  ;;  %v2389_v17 = vor.u32 %v2687_v14, %v2388_v13  ;;  %v2280_v18 = vld [vmem:[#allocation5 + $0x308] sm:$0xf] }
  0xb9   : > { %1471 = vmatpush.bf16.msrb.mxu2 %v2101_v29  ;;  %v2281_v24 = vor.u32 %v2660_v19, %v2280_v18  ;;  %v2706_v29 = vld [vmem:[#allocation8] sm:$0xff]  ;;  %v2724_v19 = vld [vmem:[#allocation8 + $0x90] sm:$0xff] }
  0xba   : > { %1484 = vmatpush.bf16.msrb.mxu3 %v2197_v30  ;;  %v2726_v13 = vld [vmem:[#allocation8 + $0xa0] sm:$0xff] }
  0xbb   : > { %1446 = vmatpush.bf16.msrb.mxu0 %v1897_v32  ;;  %v2721_v32 = vld [vmem:[#allocation8 + $0x78] sm:$0xff] }
  0xbc   : > { %1459 = vmatpush.bf16.msrb.mxu1 %v1993_v35  ;;  %v488_v35 = vperm.slane %v3206_v33, 0 }
  0xbd   : > { %1472 = vmatpush.bf16.msrb.mxu2 %v2089_v45 }
  0xbe   : > { %1447 = vmatmul.bf16.vlgmr.msrb.gmra.mxu0 %v3174_v1  ;;  %1485 = vmatpush.bf16.msrb.mxu3 %v2185_v46  ;;  %v2329_v1 = vor.u32 %v2672_v58, %v2328_v57 }
  0xbf   : > { %1491 = vmatpush.bf16.msra.mxu0 %v2365_v37  ;;  %1460 = vmatmul.bf16.vlgmr.msrb.gmra.mxu1 %v3176_v2  ;;  %v2425_v2 = vor.u32 %v2696_v60, %v2424_v59  ;;  %v2714_v59 = vld [vmem:[#allocation8 + $0x40] sm:$0xff] }
  0xc0   : > { %1504 = vmatpush.bf16.msra.mxu1 %v2461_v40  ;;  %1473 = vmatmul.bf16.vlgmr.msrb.gmra.mxu2 %v3181_v20  ;;  %v2711_v20 = vld [vmem:[#allocation8 + $0x28] sm:$0xff] }
  0xc1   : > { %1719 = vmatpush.bf16.msra.mxu2 %v2713_v48  ;;  %1486 = vmatmul.bf16.vlgmr.msrb.gmra.mxu3 %v3183_v21  ;;  %v2710_v21 = vld [vmem:[#allocation8 + $0x20] sm:$0xff] }
  0xc2   : > { %1732 = vmatpush.bf16.msra.mxu3 %v2721_v32 }
  0xc3   : > { %1492 = vmatpush.bf16.msra.mxu0 %v2353_v47 }
  0xc4   : > { %1505 = vmatpush.bf16.msra.mxu1 %v2449_v49  ;;  %v2716_v49 = vld [vmem:[#allocation8 + $0x50] sm:$0xff] }
  0xc5   : > { %1720 = vmatpush.bf16.msra.mxu2 %v2712_v55 }
  0xc6   : > { %1733 = vmatpush.bf16.msra.mxu3 %v2720_v34 }
  0xc7   : > { %1493 = vmatpush.bf16.msra.mxu0 %v2341_v54  ;;  %v2715_v54 = vld [vmem:[#allocation8 + $0x48] sm:$0xff] }
  0xc8   : > { %1506 = vmatpush.bf16.msra.mxu1 %v2437_v56 }
  0xc9   : > { %1721 = vmatpush.bf16.msra.mxu2 %v2711_v20 }
  0xca   : > { %1734 = vmatpush.bf16.msra.mxu3 %v2719_v39 }
  0xcb   : > { %1494 = vmatpush.bf16.msra.mxu0 %v2329_v1 }
  0xcc   : > { %1507 = vmatpush.bf16.msra.mxu1 %v2425_v2  ;;  %v489_v2 = vperm.slane %v3206_v33, 1 }
  0xcd   : > { %1722 = vmatpush.bf16.msra.mxu2 %v2710_v21 }
  0xce   : > { %1735 = vmatpush.bf16.msra.mxu3 %v2718_v41 }
  0xcf   : > { %1495 = vmatpush.bf16.msra.mxu0 %v2317_v3 }
  0xd0   : > { %1508 = vmatpush.bf16.msra.mxu1 %v2413_v4 }
  0xd1   : > { %1723 = vmatpush.bf16.msra.mxu2 %v2709_v15 }
  0xd2   : > { %1736 = vmatpush.bf16.msra.mxu3 %v2717_v43 }
  0xd3   : > { %1496 = vmatpush.bf16.msra.mxu0 %v2305_v9 }
  0xd4   : > { %1509 = vmatpush.bf16.msra.mxu1 %v2401_v10 }
  0xd5   : > { %1724 = vmatpush.bf16.msra.mxu2 %v2708_v25  ;;  %v2722_v25 = vld [vmem:[#allocation8 + $0x80] sm:$0xff] }
  0xd6   : > { %1737 = vmatpush.bf16.msra.mxu3 %v2716_v49  ;;  %v2814_v49 = vld [vmem:[%s3252_s4] ss:$0 sm:$0xff] }
  0xd7   : > { %1497 = vmatpush.bf16.msra.mxu0 %v2293_v16 }
  0xd8   : > { %1510 = vmatpush.bf16.msra.mxu1 %v2389_v17  ;;  %v2725_v17 = vld [vmem:[#allocation8 + $0x98] sm:$0xff] }
  0xd9   : > { %1725 = vmatpush.bf16.msra.mxu2 %v2707_v27 }
  0xda   : > { %1738 = vmatpush.bf16.msra.mxu3 %v2715_v54 }
  0xdb   : > { %1498 = vmatpush.bf16.msra.mxu0 %v2281_v24  ;;  %v1292_v28 = vpop.f32.mrf.mxu0 }
  0xdc   : > { %1511 = vmatpush.bf16.msra.mxu1 %v2377_v26  ;;  %v1305_v30 = vpop.f32.mrf.mxu1  ;;  %v1293_v40 = vadd.f32 %v1292_v28, %v488_v35 }
  0xdd   : > { %1726 = vmatpush.bf16.msra.mxu2 %v2706_v29 }
  0xde   : > { %1499 = vmatmul.bf16.vlgmr.msra.gmra.mxu0 %v3188_v31  ;;  %v1306_v42 = vadd.f32 %v1305_v30, %v1293_v40  ;;  %1739 = vmatpush.bf16.msra.mxu3 %v2714_v59  ;;  %v490_v30 = vperm.slane %v3206_v33, 2 }
  0xdf   : > { %1512 = vmatmul.bf16.vlgmr.msra.gmra.mxu1 %v3190_v36  ;;  %1745 = vmatpush.bf16.msrb.mxu0 %v2729_v5 }
  0xe3   : > { %v1294_v37 = vpop.f32.mrf.mxu0  ;;  %v1318_v36 = vpop.f32.mrf.mxu2  ;;  %1746 = vmatpush.bf16.msrb.mxu0 %v2728_v6 }
  0xe4   : > { %v1307_v38 = vpop.f32.mrf.mxu1  ;;  %v1331_v31 = vpop.f32.mrf.mxu3  ;;  %v1319_v45 = vadd.f32 %v1318_v36, %v1306_v42 }
  0xe6   : > { %v1332_v47 = vadd.f32 %v1331_v31, %v1319_v45 }
  0xe7   : > { %1747 = vmatpush.bf16.msrb.mxu0 %v2727_v8 }
  0xeb   : > { %v1320_v46 = vpop.f32.mrf.mxu2  ;;  %1748 = vmatpush.bf16.msrb.mxu0 %v2726_v13 }
  0xec   : > { %v1333_v44 = vpop.f32.mrf.mxu3 }
  0xef   : > { %1749 = vmatpush.bf16.msrb.mxu0 %v2725_v17 }
  0xf3   : > { %1750 = vmatpush.bf16.msrb.mxu0 %v2724_v19 }
  0xf7   : > { %1751 = vmatpush.bf16.msrb.mxu0 %v2723_v22 }
  0xfb   : > { %v1344_v48 = vpop.f32.mrf.mxu0  ;;  %1752 = vmatpush.bf16.msrb.mxu0 %v2722_v25 }
  0xfc   : > { %v1345_v50 = vadd.f32 %v1344_v48, %v1332_v47  ;;  %v1357_v51 = vpop.f32.mrf.mxu1 }
  0xfe   : > { %v1358_v52 = vadd.f32 %v1357_v51, %v1345_v50 }
 0x100   : > { %v1517_v53 = vmax.f32 %v1358_v52, 0.0 }
 0x102   : > { %v1520_v55 = vpack.c.bf16 %v1517_v53, %v1517_v53 }
 0x103   : > { %v1370_v56 = vpop.f32.mrf.mxu2  ;;  %v1346_v57 = vpop.f32.mrf.mxu0 }
 0x104   : > { %1727 = vmatmul.bf16.vlgmr.msra.gmra.mxu2 %v1520_v55  ;;  %v1359_v58 = vpop.f32.mrf.mxu1  ;;  %v1383_v60 = vpop.f32.mrf.mxu3  ;;  %v1371_v62 = vadd.f32 %v1370_v56, %v489_v2 }
 0x106   : > { %v1384_v63 = vadd.f32 %v1383_v60, %v1371_v62 }
 0x10b   : > { %v1372_v1 = vpop.f32.mrf.mxu2 }
 0x10c   : > { %v1385_v61 = vpop.f32.mrf.mxu3 }
 0x11b   : > { %v1396_v0 = vpop.f32.mrf.mxu0 }
 0x11c   : > { %v1397_v3 = vadd.f32 %v1396_v0, %v1384_v63  ;;  %v1409_v4 = vpop.f32.mrf.mxu1 }
 0x11e   : > { %v1410_v20 = vadd.f32 %v1409_v4, %v1397_v3 }
 0x123   : > { %v1422_v7 = vpop.f32.mrf.mxu2  ;;  %v1398_v9 = vpop.f32.mrf.mxu0 }
 0x124   : > { %v1423_v21 = vadd.f32 %v1422_v7, %v1410_v20  ;;  %v1435_v10 = vpop.f32.mrf.mxu3  ;;  %v1411_v11 = vpop.f32.mrf.mxu1 }
 0x126   : > { %v1436_v12 = vadd.f32 %v1435_v10, %v1423_v21 }
 0x128   : > { %v1518_v14 = vmax.f32 %v1436_v12, 0.0 }
 0x12a   : > { %v1521_v15 = vpack.c.bf16 %v1518_v14, %v1518_v14 }
 0x12b   : > { %v1424_v16 = vpop.f32.mrf.mxu2 }
 0x12c   : > { %1740 = vmatmul.bf16.vlgmr.msra.gmra.mxu3 %v1521_v15  ;;  %v1437_v18 = vpop.f32.mrf.mxu3 }
 0x13b   : > { %v1448_v23 = vpop.f32.mrf.mxu0 }
 0x13c   : > { %v1461_v24 = vpop.f32.mrf.mxu1  ;;  %v1449_v32 = vadd.f32 %v1448_v23, %v490_v30 }
 0x13e   : > { %v1462_v37 = vadd.f32 %v1461_v24, %v1449_v32 }
 0x143   : > { %v1450_v26 = vpop.f32.mrf.mxu0  ;;  %v1474_v28 = vpop.f32.mrf.mxu2 }
 0x144   : > { %v1463_v27 = vpop.f32.mrf.mxu1  ;;  %v1487_v29 = vpop.f32.mrf.mxu3  ;;  %v1475_v38 = vadd.f32 %v1474_v28, %v1462_v37 }
 0x146   : > { %v1488_v39 = vadd.f32 %v1487_v29, %v1475_v38 }
 0x14b   : > { %v1476_v34 = vpop.f32.mrf.mxu2 }
 0x14c   : > { %v1489_v35 = vpop.f32.mrf.mxu3 }
 0x15b   : > { %v1500_v31 = vpop.f32.mrf.mxu0 }
 0x15c   : > { %v1501_v40 = vadd.f32 %v1500_v31, %v1488_v39  ;;  %v1513_v36 = vpop.f32.mrf.mxu1 }
 0x15e   : > { %v1514_v41 = vadd.f32 %v1513_v36, %v1501_v40 }
 0x160   : > { %v1519_v42 = vmax.f32 %v1514_v41, 0.0 }
 0x162   : > { %v1522_v43 = vpack.c.bf16 %v1519_v42, %v1519_v42 }
 0x163   : > { %v1502_v44 = vpop.f32.mrf.mxu0 }
 0x164   : > { %v1515_v45 = vpop.f32.mrf.mxu1  ;;  %1753 = vmatmul.bf16.vlgmr.msrb.gmra.mxu0 %v1522_v43 }
 0x187   : > { %v1728_v46 = vpop.f32.mrf.mxu2 }
 0x188   : > { %v1729_v50 = vadd.f32 %v2814_v49, %v1728_v46 }
 0x18f   : > { %v1730_v47 = vpop.f32.mrf.mxu2 }
 0x1af   : > { %v1741_v33 = vpop.f32.mrf.mxu3 }
 0x1b0   : > { %v1742_v51 = vadd.f32 %v1741_v33, %v1729_v50 }
 0x1b7   : > { %v1743_v48 = vpop.f32.mrf.mxu3 }
 0x1e1   : > { %v1754_v52 = vpop.f32.mrf.mxu0 }
 0x1e2   : > { %v1755_v53 = vadd.f32 %v1754_v52, %v1742_v51 }
 0x1e4   : > { %1758 = vst [vmem:[%s290_s17] sm:$0xff] %v1755_v53 }
 0x1e5   : > { %2962 = shalt.err (!%p2959_p9)
}
 0x1e6   : > { %2747 = dma.vmem_to_hbm [thread:$0]  (%p3124_p0), %s1773_s22, 128, %s1775_s23, %s1760_s25  }
 0x1e9   : > { %v1756_v54 = vpop.f32.mrf.mxu0 }
 0x1ea PF: > { %s1786_s7 = sand.u32 1, %s2997_s18   ;;  %p3264_p10 = scmp.ge.s32.totalorder %s3009_s21, 2 }
 0x1eb   : > { %s1787_s2 = scalar_lea.sflag [#allocation4], %s1786_s7 }
 0x1ec   : > { %p2764_p11 = pnand %p3264_p10, %p3130_p6 }
 0x1ee   : > { %p2765_p12 = pneg %p2764_p11 }
 0x1f0   : > { %2992 = dma.done.wait (%p2765_p12), %s1787_s2, 128  }
 0x1f1   : > { %2994 = vsyncadd (%p2765_p12), %s1787_s2, 4294967168  ;;  %p20_p2 = scmp.ge.s32.totalorder %s3104_s24, 4   ;;  %s3265_s18 = smov %s3001_s19 }
 0x1f2   : > { %s3266_s19 = smov %s3005_s20  ;;  %s3267_s20 = smov %s3116_s29 }
 0x1f3   : > { %s3268_s21 = smov %s3104_s24  ;;  %22 = sbr.rel (!%p20_p2) target bundleno = 10 (0xa), region = 97 }
 0x1f8   :  { %1793 = vsyncpa [#allocation3], 1 }
 0x1f9   :  { %1795 = vsyncpa [#allocation3 + $0x1], 1 }
 0x1fa   :  { %1796 = vsyncpa [#allocation6], 1 }
 0x1fb   :  { %1797 = vsyncpa [#allocation9], 1 }
 0x1fc   :  { %1798 = vsyncpa [#allocation4], 1 }
 0x1fd   :  { %1800 = vsyncpa [#allocation4 + $0x1], 1 }

</bundles_post_ra>
